<compile_context>
chip_gen: v5e
topology: v5e:2x2
jax: 0.10.0
libtpu: 0.0.40
codegen_flags: <defaults>
</compile_context>

<pallas_src>
import math

import jax
import jax.numpy as jnp
from jax.experimental import pallas as pl
from jax.experimental.pallas import tpu as pltpu

_LANE = 128
_TARGET_BLOCK_BYTES = 4 * 1024 * 1024     # per x/out block; leaves headroom for the
                                          # noise block + f32 temporaries
_VMEM_LIMIT_BYTES = 48 * 1024 * 1024


def _pick_r_block(B, CK, R, lane, itemsize):
    """Rows (2nd-minor dim) per block: multiple of 8 (sublane-dense), ~4 MiB per
    x block, and at least 2 grid blocks total so both v7x TensorCores get work."""
    if R <= 8:
        return R                                   # full dim (always a legal block)
    rows = _TARGET_BLOCK_BYTES // max(1, CK * lane * itemsize)
    rows = max(8, (rows // 8) * 8)
    rows = min(R, rows)
    while B * pl.cdiv(R, rows) < 2 and rows > 8:
        rows = max(8, ((rows // 2) // 8) * 8)
    return int(rows)


def _standard_normal(shape):
    """Standard-normal sample from the (already seeded) stateful TPU PRNG."""
    if hasattr(pltpu, "stateful_normal"):
        return pltpu.stateful_normal(shape, jnp.float32)
    # Box-Muller fallback on raw PRNG bits; uses BOTH outputs (cos and sin) so
    # each (u1, u2) pair fills two rows (half the draws / transcendentals).
    rows, lanes = shape
    half = max(rows // 2, 1)

    def _uniform(s):
        bits = pltpu.prng_random_bits(s)
        if bits.dtype != jnp.uint32:
            bits = pltpu.bitcast(bits, jnp.uint32)
        return (bits >> 9).astype(jnp.float32) * (1.0 / float(1 << 23))   # [0, 1)

    u1 = _uniform((half, lanes))
    u2 = _uniform((half, lanes))
    r = jnp.sqrt(-2.0 * jnp.log(1.0 - u1))
    t = (2.0 * math.pi) * u2
    n = jnp.concatenate([r * jnp.cos(t), r * jnp.sin(t)], axis=0)
    if n.shape[0] < rows:                          # odd row count: one extra row
        u1e, u2e = _uniform((1, lanes)), _uniform((1, lanes))
        extra = jnp.sqrt(-2.0 * jnp.log(1.0 - u1e)) * jnp.cos((2.0 * math.pi) * u2e)
        n = jnp.concatenate([n, extra], axis=0)
    return n[:rows]


def _noise_injection_prng_kernel(seed_ref, w_ref, x_ref, o_ref):
    """out = x + w * noise; noise generated on-chip, shared across the CK axis.

    seed_ref : SMEM (1,) int32       base RNG seed
    w_ref    : SMEM (1,) float32     scalar NoiseInjection weight
    x_ref    : VMEM (1, CK, r_blk, LANE) in the input dtype
    o_ref    : VMEM (1, CK, r_blk, LANE) in the input dtype
    """
    b = pl.program_id(0)
    r = pl.program_id(1)
    # Deterministic per-(batch, row-block) reseed -> result independent of how
    # the "parallel" grid axes are split across TensorCores.
    pltpu.prng_seed(seed_ref[0], b, r)
    noise = _standard_normal((x_ref.shape[2], x_ref.shape[3]))     # (r_blk, LANE) f32
    x = x_ref[0].astype(jnp.float32)                               # (CK, r_blk, LANE)
    o_ref[0] = (x + w_ref[0] * noise[None, :, :]).astype(o_ref.dtype)


def _noise_injection_add_kernel(w_ref, x_ref, n_ref, o_ref):
    """out = x + w * noise; noise streamed from HBM, shared across the CK axis."""
    x = x_ref[0].astype(jnp.float32)               # (CK, r_blk, LANE)
    n = n_ref[...].astype(jnp.float32)             # (1,  r_blk, LANE) -> bcast over CK
    o_ref[0] = (x + w_ref[0] * n).astype(o_ref.dtype)


@jax.jit
def _forward_onchip(x4, w1, seed1):
    B, CK, R, lane = x4.shape
    r_blk = _pick_r_block(B, CK, R, lane, x4.dtype.itemsize)
    return pl.pallas_call(
        _noise_injection_prng_kernel,
        out_shape=jax.ShapeDtypeStruct(x4.shape, x4.dtype),
        grid=(B, pl.cdiv(R, r_blk)),
        in_specs=[
            pl.BlockSpec(memory_space=pltpu.MemorySpace.SMEM),            # seed
            pl.BlockSpec(memory_space=pltpu.MemorySpace.SMEM),            # weight
            pl.BlockSpec((1, CK, r_blk, lane), lambda b, r: (b, 0, r, 0)),
        ],
        out_specs=pl.BlockSpec((1, CK, r_blk, lane), lambda b, r: (b, 0, r, 0)),
        compiler_params=pltpu.CompilerParams(
            dimension_semantics=("parallel", "parallel"),
            vmem_limit_bytes=_VMEM_LIMIT_BYTES),
    )(seed1, w1, x4)


@jax.jit
def _forward_precomputed(x4, w1, key):
    B, CK, R, lane = x4.shape
    r_blk = _pick_r_block(B, CK, R, lane, x4.dtype.itemsize)
    # Noise kept in the input dtype (matches torch's input.new_empty().normal_()).
    noise = jax.random.normal(key, (B, R, lane), dtype=x4.dtype)
    return pl.pallas_call(
        _noise_injection_add_kernel,
        out_shape=jax.ShapeDtypeStruct(x4.shape, x4.dtype),
        grid=(B, pl.cdiv(R, r_blk)),
        in_specs=[
            pl.BlockSpec(memory_space=pltpu.MemorySpace.SMEM),            # weight
            pl.BlockSpec((1, CK, r_blk, lane), lambda b, r: (b, 0, r, 0)),
            pl.BlockSpec((1, r_blk, lane), lambda b, r: (b, r, 0)),
        ],
        out_specs=pl.BlockSpec((1, CK, r_blk, lane), lambda b, r: (b, 0, r, 0)),
        compiler_params=pltpu.CompilerParams(
            dimension_semantics=("parallel", "parallel"),
            vmem_limit_bytes=_VMEM_LIMIT_BYTES),
    )(w1, x4, noise)


def noise_injection_forward(x, weight, seed=0):
    """NoiseInjection forward for 3D/4D/5D inputs (PyTorch layouts), dtype-preserving."""
    shape = x.shape
    if x.ndim == 3:
        B, L, C = shape
        ck, S = 1, L * C            # full-shape noise == broadcast over a size-1 "channel"
    elif x.ndim == 4:
        B, C, H, W = shape
        ck, S = C, H * W
    elif x.ndim == 5:
        B, C, L, H, W = shape
        ck, S = C, L * H * W
    else:
        raise ValueError("NoiseInjection supports only 3D-5D tensors.")
    lane = _LANE if S % _LANE == 0 else S     # lane-dense fast path / ragged fallback
    R = S // lane
    x4 = x.reshape(B, ck, R, lane)            # contiguous -> free reshape, no dtype cast
    w1 = jnp.asarray(weight, jnp.float32).reshape(1)
    if jax.default_backend() == "tpu":
        # On-chip hardware PRNG: no HBM traffic for the noise at all.
        out4 = _forward_onchip(x4, w1, jnp.asarray([seed], jnp.int32))
    else:
        # CPU / interpreter backend has no lowering for pltpu.prng_seed; stream a
        # precomputed noise array (1/C of x's bytes for 4D/5D inputs) instead.
        out4 = _forward_precomputed(x4, w1, jax.random.PRNGKey(seed))
    return out4.reshape(shape)


if __name__ == "__main__":
    key = jax.random.PRNGKey(0)
    B, C, H, W = 2, 4, 16, 16
    x = jax.random.normal(key, (B, C, H, W), dtype=jnp.float32)

    # 1) Default parameter init (weight = 0): identity, exact, dtype preserved.
    w0 = jnp.zeros((1,), jnp.float32)
    out0 = jax.block_until_ready(noise_injection_forward(x, w0, seed=0))
    assert out0.shape == x.shape and out0.dtype == x.dtype
    assert jnp.array_equal(out0, x), "weight=0 must be the identity"

    # 2) Non-zero weight: recovered noise shared across channels and ~N(0,1).
    wv = 0.5
    out1 = jax.block_until_ready(
        noise_injection_forward(x, jnp.full((1,), wv, jnp.float32), seed=123))
    n = (out1 - x) / wv                                    # (B, C, H, W)
    assert float(jnp.max(jnp.abs(n - n[:, :1]))) < 1e-4, "noise must broadcast over C"
    samples = n[:, 0].ravel()                              # B*H*W = 512 iid draws
    mean = float(jnp.mean(samples))
    std = float(jnp.std(samples))
    assert abs(mean) < 0.25, f"noise mean off: {mean}"
    assert abs(std - 1.0) < 0.3, f"noise std off: {std}"

    # 3) 3D / 5D layouts and bf16 dtype preservation (weight = 0 identity).
    x3d = jax.random.normal(jax.random.PRNGKey(1), (2, 8, 32), dtype=jnp.float32)
    assert jnp.array_equal(
        jax.block_until_ready(noise_injection_forward(x3d, w0, seed=7)), x3d)
    x5d = jax.random.normal(jax.random.PRNGKey(2), (2, 4, 3, 8, 8), dtype=jnp.float32)
    assert jnp.array_equal(
        jax.block_until_ready(noise_injection_forward(x5d, w0, seed=7)), x5d)
    xbf = x.astype(jnp.bfloat16)
    outbf = jax.block_until_ready(noise_injection_forward(xbf, w0, seed=3))
    assert outbf.dtype == jnp.bfloat16 and jnp.array_equal(outbf, xbf)

    print("KERNEL_OK")
</pallas_src>

<mosaic_0001>
module attributes {stable_mosaic.version = 11 : i64} {
  func.func @_noise_injection_add_kernel(%arg0: i32, %arg1: i32, %arg2: memref<1xf32, #tpu.memory_space<smem>>, %arg3: memref<1x4x2x128xf32, #tpu.memory_space<vmem>>, %arg4: memref<1x2x128xf32, #tpu.memory_space<vmem>>, %arg5: memref<1x4x2x128xf32, #tpu.memory_space<vmem>>) attributes {dimension_semantics = [#tpu.dimension_semantics<parallel>, #tpu.dimension_semantics<parallel>], iteration_bounds = array<i64: 2, 1>, scalar_prefetch = 0 : i64, scratch_operands = 0 : i64, tpu.core_type = #tpu.core_type<tc>, window_params = [{transform_indices = @transform_0, window_bounds = array<i64: 1>}, {transform_indices = @transform_1, window_bounds = array<i64: 1, 4, 2, 128>}, {transform_indices = @transform_2, window_bounds = array<i64: 1, 2, 128>}, {transform_indices = @transform_3, window_bounds = array<i64: 1, 4, 2, 128>}]} {
    %c0 = arith.constant 0 : index
    %c0_0 = arith.constant 0 : index
    %c0_1 = arith.constant 0 : index
    %c0_2 = arith.constant 0 : index
    %0 = vector.load %arg3[%c0, %c0_0, %c0_1, %c0_2] : memref<1x4x2x128xf32, #tpu.memory_space<vmem>>, vector<1x4x2x128xf32>
    %1 = vector.shape_cast %0 : vector<1x4x2x128xf32> to vector<4x2x128xf32>
    %c0_3 = arith.constant 0 : index
    %c0_4 = arith.constant 0 : index
    %c0_5 = arith.constant 0 : index
    %2 = vector.load %arg4[%c0_3, %c0_4, %c0_5] : memref<1x2x128xf32, #tpu.memory_space<vmem>>, vector<1x2x128xf32>
    %c0_6 = arith.constant 0 : index
    %3 = memref.load %arg2[%c0_6] : memref<1xf32, #tpu.memory_space<smem>>
    %4 = vector.broadcast %3 : f32 to vector<1x2x128xf32>
    %5 = arith.mulf %4, %2 : vector<1x2x128xf32>
    %6 = vector.broadcast %5 : vector<1x2x128xf32> to vector<4x2x128xf32>
    %7 = arith.addf %1, %6 : vector<4x2x128xf32>
    %c0_7 = arith.constant 0 : index
    %c0_8 = arith.constant 0 : index
    %c0_9 = arith.constant 0 : index
    %c0_10 = arith.constant 0 : index
    %8 = vector.load %arg5[%c0_7, %c0_8, %c0_9, %c0_10] : memref<1x4x2x128xf32, #tpu.memory_space<vmem>>, vector<1x4x2x128xf32>
    %9 = vector.shape_cast %8 : vector<1x4x2x128xf32> to vector<4x2x128xf32>
    %10 = vector.shape_cast %7 : vector<4x2x128xf32> to vector<1x4x2x128xf32>
    tpu.vector_store %arg5[%c0_7, %c0_8, %c0_9, %c0_10], %10 {strides = array<i32>} : memref<1x4x2x128xf32, #tpu.memory_space<vmem>>, vector<1x4x2x128xf32>,
    return
  }
  func.func @transform_0(%arg0: i32, %arg1: i32) -> i32 {
    %c0_i32 = arith.constant 0 : i32
    %c0_i32_0 = arith.constant 0 : i32
    return %c0_i32 : i32
  }
  func.func @transform_1(%arg0: i32, %arg1: i32) -> (i32, i32, i32, i32) {
    %c0_i32 = arith.constant 0 : i32
    %c0_i32_0 = arith.constant 0 : i32
    %c0_i32_1 = arith.constant 0 : i32
    return %arg0, %c0_i32, %arg1, %c0_i32_0 : i32, i32, i32, i32
  }
  func.func @transform_2(%arg0: i32, %arg1: i32) -> (i32, i32, i32) {
    %c0_i32 = arith.constant 0 : i32
    %c0_i32_0 = arith.constant 0 : i32
    return %arg0, %arg1, %c0_i32 : i32, i32, i32
  }
  func.func @transform_3(%arg0: i32, %arg1: i32) -> (i32, i32, i32, i32) {
    %c0_i32 = arith.constant 0 : i32
    %c0_i32_0 = arith.constant 0 : i32
    %c0_i32_1 = arith.constant 0 : i32
    return %arg0, %c0_i32, %arg1, %c0_i32_0 : i32, i32, i32, i32
  }
}

</mosaic_0001>

<bundles_post_ra>
// kernel: _forward_precomputed.1
= control target key start
LH: loop header
LB: loop body
LE: loop exit
PB: predicated region body
PF: predicated region fallthrough
CT: control target
= control target key end

     0   :  { %s631_s0 = inlined_call_operand.<no memory space> [shape: f32[1], index: 0, kind: input, shape index: {}]   ;;  %s632_s1 = inlined_call_operand.vmem [shape: f32[2,4,2,128], index: 1, kind: input, shape index: {}]   ;;  %s633_s2 = inlined_call_operand.vmem [shape: f32[2,2,128], index: 2, kind: input, shape index: {}]   ;;  %s634_s3 = inlined_call_operand.hbm [shape: f32[2,4,2,128], index: 3, kind: output, shape index: {}]  }
   0x1   :  { %8 = sst [smem:[#allocation2]] %s631_s0 }
   0x2   :  { %9 = vsyncpa [#allocation4], 0 }
   0x3   :  { %11 = vsyncpa [#allocation4 + $0x1], 0  ;;  %s527_s14 = smov 0   ;;  %s529_s15 = smov 0  }
   0x4   :  { %s531_s16 = smov 0   ;;  %s533_s17 = smov 0  }
   0x5   :  { %s535_s18 = smov 0   ;;  %s537_s19 = smov 0  }
   0x6 LB: > { %s349_s0 = sadd.s32 4294967295, %s500_s19   ;;  %s350_s20 = sadd.s32 4294967294, %s500_s19   ;;  %s500_s19 = sphi %s537_s19, %s17_s19   ;;  %s496_s18 = sphi %s535_s18, %s641_s18   ;;  %s492_s17 = sphi %s533_s17, %s640_s17   ;;  %s488_s16 = sphi %s531_s16, %s639_s16   ;;  %s484_s15 = sphi %s529_s15, %s638_s15   ;;  %s480_s14 = sphi %s527_s14, %s637_s14  }
   0x7   : > { %s29_s21 = sadd.s32 1, %s496_s18  ;;  %s115_s22 = sadd.s32 1, %s488_s16 }
   0x8   : > { %p31_p0 = scmp.ge.s32.totalorder %s29_s21, 2  ;;  %p125_p1 = scmp.ne.s32.totalorder %s488_s16, %s484_s15 }
   0x9   : > { %p126_p2 = scmp.eq.s32.totalorder %s349_s0, 1  ;;  %p131_p3 = scmp.ne.s32.totalorder %s484_s15, %s480_s14 }
   0xa   : > { %s643_s21 = smov (%p31_p0, %s29_s21), 0  ;;  %p132_p5 = scmp.eq.s32.totalorder %s350_s20, 1 }
   0xb   : > { %p567_p4 = por %p126_p2, %p125_p1  ;;  %s110_s24 = ssub.s32 %s496_s18, %s643_s21 }
   0xc   : > { %p353_p6 = scmp.ge.s32.totalorder %s500_s19, 1  ;;  %p113_p7 = scmp.eq.s32.totalorder %s110_s24, 0 }
   0xd   : > { %p574_p8 = por %p132_p5, %p131_p3  ;;  %p174_p9 = scmp.lt.s32.totalorder %s500_s19, 3 }
   0xe   : > { %s580_s26 = scalar_select %p113_p7, %s488_s16, %s115_s22  }
   0xf   : > { %p175_p10 = pnand %p353_p6, %p174_p9 }
  0x10   : > { %s205_s27 = sand.u32 (!%p175_p10), 1, %s484_s15   ;;  %p208_p11 = scmp.lt.s32.totalorder (!%p175_p10), %s492_s17, 1 }
  0x11   : > { %178 = sbr.rel (%p175_p10) target bundleno = 41 (0x29), region = 32  ;;  %s354_s28 = sshll.u32 (!%p175_p10), %s205_s27, 3 }
  0x12   : > { %s228_s29 = sld [smem:[#allocation2]] (!%p175_p10)  ;;  %s364_s4 = sshll.u32 (!%p175_p10), %s492_s17, 3 }
  0x13   : > { %s252_s20 = scalar_lea.hbm (!%p175_p10), %s634_s3, %s364_s4 }
  0x14   : > { %s255_s24 = sshll.u32 (!%p175_p10), %s252_s20, 4  ;;  %s256_s24 = int_to_ptr.hbm [resolvable:$true] %s255_s24 }
  0x16   : > { %s209_s30 = scalar_select %p208_p11, %s492_s17, 1 }
  0x17   : > { %s207_s17 = scalar_lea.vmem [#allocation3], %s354_s28 }
  0x18   : > { %s363_s5 = sshll.u32 %s209_s30, 3  ;;  %s357_s6 = sshll.u32 %s209_s30, 1  ;;  %v229_v2 = vstv %s228_s29 }
  0x19   : > { %s215_s9 = scalar_lea.vmem %s632_s1, %s363_s5  ;;  %s222_s12 = scalar_lea.vmem %s633_s2, %s357_s6 }
  0x1a   : > { %v223_v0 = vld [vmem:[%s215_s9] sm:$0x3]  ;;  %v224_v3 = vld [vmem:[%s215_s9 + $0x2] sm:$0x3]  ;;  %v225_v5 = vld [vmem:[%s215_s9 + $0x4] sm:$0x3] }
  0x1b   : > { %v227_v1 = vld [vmem:[%s222_s12] sm:$0x3]  ;;  %v226_v6 = vld [vmem:[%s215_s9 + $0x6] sm:$0x3]  ;;  %s253_s22 = sshll.u32 %s207_s17, 4  ;;  %s240_s29 = scalar_lea.sflag [#allocation4], %s205_s27  ;;  %s254_s22 = int_to_ptr.vmem [resolvable:$true] %s253_s22 }
  0x1c   : > { %v230_v4 = vmul.f32 %v229_v2, %v227_v1  ;;  %s436_s30 = sshra.s32 %s256_s24, 4  ;;  %s442_s6 = scalar_lea.hbm %s634_s3, 16  ;;  %s437_s30 = int_to_ptr.hbm [resolvable:$true] %s436_s30 }
  0x1d   : > { %s438_s4 = scalar_lea.hbm %s437_s30, 8  ;;  %p443_p1 = scmp.lt.s32.totalorder %s437_s30, %s634_s3 }
  0x1e   : > { %v231_v7 = vadd.f32 %v230_v4, %v223_v0  ;;  %v232_v8 = vadd.f32 %v230_v4, %v224_v3  ;;  %v233_v9 = vadd.f32 %v230_v4, %v225_v5  ;;  %v234_v10 = vadd.f32 %v230_v4, %v226_v6  ;;  %p439_p12 = scmp.ne.s32.totalorder %s437_s30, %s438_s4  ;;  %p444_p2 = scmp.lt.s32.totalorder %s442_s6, %s438_s4 }
  0x20   : > { %235 = vst [vmem:[%s207_s17] sm:$0x3] %v231_v7  ;;  %p440_p13 = pnand %p439_p12, %p567_p4  ;;  %p445_p3 = por %p444_p2, %p443_p1 }
  0x21   : > { %236 = vst [vmem:[%s207_s17 + $0x2] sm:$0x3] %v232_v8 }
  0x22   : > { %237 = vst [vmem:[%s207_s17 + $0x4] sm:$0x3] %v233_v9  ;;  %p441_p0 = pneg %p440_p13 }
  0x23   : > { %238 = vst [vmem:[%s207_s17 + $0x6] sm:$0x3] %v234_v10 }
  0x24   : > { %p446_p5 = pnand %p445_p3, %p441_p0 }
  0x26   : > { %449 = shalt.err (!%p446_p5)
}
  0x27   : > { %s502_s27 = smov 32   ;;  %s503_s9 = smov 2  }
  0x28   : > { %365 = dma.vmem_to_hbm [thread:$0]  (%p567_p4), %s254_s22, 128, %s256_s24, %s240_s29, %s502_s27, %s502_s27, %s503_s9  }
  0x29 PF: > { %p371_p6 = scmp.ge.s32.totalorder %s500_s19, 2  ;;  %s270_s10 = sand.u32 1, %s480_s14  }
  0x2a   : > { %s271_s11 = scalar_lea.sflag [#allocation4], %s270_s10 }
  0x2b   : > { %p368_p7 = pnand %p371_p6, %p574_p8 }
  0x2d   : > { %p369_p9 = pneg %p368_p7 }
  0x2f   : > { %475 = dma.done.wait (%p369_p9), %s271_s11, 128  }
  0x30   : > { %477 = vsyncadd (%p369_p9), %s271_s11, 4294967168  ;;  %s17_s19 = sadd.s32 1, %s500_s19   ;;  %s637_s14 = smov %s484_s15 }
  0x31   : > { %p14_p10 = scmp.ge.s32.totalorder %s17_s19, 4   ;;  %s638_s15 = smov %s488_s16 }
  0x32   : > { %s639_s16 = smov %s580_s26  ;;  %s640_s17 = smov %s496_s18 }
  0x33   : > { %s641_s18 = smov %s643_s21  ;;  %16 = sbr.rel (!%p14_p10) target bundleno = 6 (0x6), region = 70 }
  0x38   :  { %277 = vsyncpa [#allocation4], 1 }
  0x39   :  { %279 = vsyncpa [#allocation4 + $0x1], 1 }

</bundles_post_ra>
